<compile_context>
chip_gen: v7x
topology: tpu7x:2x2x1
jax: 0.10.0
libtpu: 0.0.40
codegen_flags: <defaults>
</compile_context>

<pallas_src>
import functools

import jax
import jax.numpy as jnp
from jax import lax
from jax.experimental import pallas as pl
from jax.experimental.pallas import tpu as pltpu


def _avg_pool_kernel(x_ref, tab_ref, o_ref, *, ksize, pad, width):
    """x_ref/o_ref: (Rt, L); tab_ref: (2K+1, L) f32.

    tab rows [0:K)      horizontal validity masks (per window dw offset)
    tab rows [K:2K)     vertical validity masks   (per window dh offset)
    tab row  [2K]       1 / (number of in-bounds window elements)
    Rows (grouped N*C) are independent; the KxK window sum is realized as
    lane rolls of the flattened lane axis plus border-validity masks.
    """
    x = x_ref[...].astype(jnp.float32)
    lanes = x.shape[-1]
    lane_axis = x.ndim - 1          # pltpu.roll requires a non-negative axis

    # ---- horizontal (along-W) masked window sum: lane rolls by +-dw ----
    t = x                           # dw = 0 term (mask is all ones)
    for k in range(ksize):
        dw = k - pad
        if dw == 0:
            continue
        # shifted[p] = x[(p + dw) % lanes]  (wrap-around neutralized by mask)
        shifted = pltpu.roll(x, shift=(-dw) % lanes, axis=lane_axis)
        t = t + shifted * tab_ref[k:k + 1, :]

    # ---- vertical (along-H) masked window sum: lane rolls by +-dh*W ----
    s = t                           # dh = 0 term
    for k in range(ksize):
        dh = k - pad
        if dh == 0:
            continue
        shifted = pltpu.roll(t, shift=(-dh * width) % lanes, axis=lane_axis)
        s = s + shifted * tab_ref[ksize + k:ksize + k + 1, :]

    # ---- divide by count of non-padded elements (count_include_pad=False) ----
    o_ref[...] = (s * tab_ref[2 * ksize:2 * ksize + 1, :]).astype(o_ref.dtype)


def _round_up(a, m):
    return ((a + m - 1) // m) * m


@functools.partial(jax.jit, static_argnames=("kernel_size", "padding", "stride"))
def ws_avg_pool2d(x_nchw, kernel_size=3, padding=1, stride=1):
    """x_nchw: (N, C, H, W) -> (N, C, H, W) average pool, count_include_pad=False."""
    if stride != 1:
        raise NotImplementedError("only stride=1 (module default) is implemented")
    if kernel_size != 2 * padding + 1:
        raise NotImplementedError("only 'same' pooling (k == 2*pad + 1) is implemented")

    N, C, H, W = x_nchw.shape
    K, P = kernel_size, padding
    R0, HW = N * C, H * W
    dtype = x_nchw.dtype

    # ---- lane-density grouping: pack G images per row when HW < 128 ----
    G = 1
    if HW < 128:
        G = -(-128 // HW)                        # ceil(128 / HW)
        while G > 1 and R0 % G:                  # keep the reshape a free view
            G -= 1
    R, L = R0 // G, G * HW
    x_flat = x_nchw.reshape(R, L)                # free view: lanes carry G*H*W

    # ---- grid-invariant tables (f32), fused into one constant-index block ----
    h_idx = jnp.arange(H)
    w_idx = jnp.arange(W)
    dh = jnp.arange(K) - P
    dw = jnp.arange(K) - P

    # number of in-bounds (non-padded) elements contributing at each position
    ch = jnp.minimum(h_idx + P, H - 1) - jnp.maximum(h_idx - P, 0) + 1       # (H,)
    cw = jnp.minimum(w_idx + P, W - 1) - jnp.maximum(w_idx - P, 0) + 1       # (W,)
    inv_cnt = (1.0 / (ch[:, None] * cw[None, :]).astype(jnp.float32)).reshape(1, HW)

    col_ok = ((w_idx[None, :] + dw[:, None] >= 0)
              & (w_idx[None, :] + dw[:, None] < W)).astype(jnp.float32)      # (K, W)
    row_ok = ((h_idx[None, :] + dh[:, None] >= 0)
              & (h_idx[None, :] + dh[:, None] < H)).astype(jnp.float32)      # (K, H)
    col_mask = jnp.broadcast_to(col_ok[:, None, :], (K, H, W)).reshape(K, HW)
    row_mask = jnp.broadcast_to(row_ok[:, :, None], (K, H, W)).reshape(K, HW)

    tables = jnp.concatenate([col_mask, row_mask, inv_cnt], axis=0)          # (2K+1, HW)
    if G > 1:
        tables = jnp.tile(tables, (1, G))                                    # (2K+1, L)

    # ---- generation-aware row tiling + explicit VMEM budget ----
    itemsize = jnp.dtype(dtype).itemsize
    # per-row footprint: 2 double-buffered input rows + 2 output rows (input
    # dtype) + ~4 live f32 block temporaries (x, t, s, shifted).
    foot_row = L * (4 * itemsize + 4 * 4)
    try:
        info_fn = getattr(pltpu, "get_tpu_info", None)
        vmem_cap = int(info_fn().vmem_capacity_bytes) if info_fn else (64 << 20)
    except Exception:
        vmem_cap = 64 << 20
    budget = vmem_cap // 2                       # leave headroom
    rt_max = max(8, (budget // foot_row) // 8 * 8)
    rt = min(rt_max, _round_up(R, 8))
    # v7x megacore: prefer >= 2 grid steps when each block still has >= 8 rows
    if pl.cdiv(R, rt) < 2 and R >= 16:
        rt = max(8, _round_up(pl.cdiv(R, 2), 8))
    grid = (pl.cdiv(R, rt),)

    tab_bytes = int(tables.size) * 4
    vmem_limit = int(min(vmem_cap,
                         max(rt * foot_row + 2 * tab_bytes + (4 << 20), 16 << 20)))

    kernel = functools.partial(_avg_pool_kernel, ksize=K, pad=P, width=W)

    out_flat = pl.pallas_call(
        kernel,
        out_shape=jax.ShapeDtypeStruct((R, L), dtype),
        grid_spec=pltpu.PrefetchScalarGridSpec(
            num_scalar_prefetch=0,
            grid=grid,
            in_specs=[
                pl.BlockSpec((rt, L), lambda i: (i, 0)),          # activations
                pl.BlockSpec((2 * K + 1, L), lambda i: (0, 0)),   # fused tables
            ],
            out_specs=pl.BlockSpec((rt, L), lambda i: (i, 0)),
        ),
        compiler_params=pltpu.CompilerParams(
            dimension_semantics=("parallel",),
            vmem_limit_bytes=vmem_limit),
    )(x_flat, tables)

    return out_flat.reshape(N, C, H, W)


def _reference(x, kernel_size, padding):
    """Pure-JAX avg_pool2d with count_include_pad=False (stride 1)."""
    dims = (1, 1, kernel_size, kernel_size)
    strides = (1, 1, 1, 1)
    pads = ((0, 0), (0, 0), (padding, padding), (padding, padding))
    zero = jnp.zeros((), x.dtype)
    sums = lax.reduce_window(x, zero, lax.add, dims, strides, pads)
    cnts = lax.reduce_window(jnp.ones_like(x), zero, lax.add, dims, strides, pads)
    return sums / cnts


if __name__ == "__main__":
    key = jax.random.PRNGKey(0)
    k1, k2, k3 = jax.random.split(key, 3)

    # Case 1: 16x16 feature map (HW = 256 lanes), K=3.
    x1 = jax.random.normal(k1, (2, 4, 16, 16), jnp.float32)
    out1 = jax.block_until_ready(ws_avg_pool2d(x1, kernel_size=3, padding=1))
    ref1 = jax.block_until_ready(_reference(x1, 3, 1))
    assert out1.shape == x1.shape, out1.shape
    assert jnp.allclose(out1, ref1, rtol=1e-5, atol=1e-5), \
        float(jnp.max(jnp.abs(out1 - ref1)))

    # Case 2: 8x8 feature map (HW = 64 < 128) exercises lane grouping (G = 2).
    x2 = jax.random.normal(k2, (2, 4, 8, 8), jnp.float32)
    out2 = jax.block_until_ready(ws_avg_pool2d(x2, kernel_size=3, padding=1))
    ref2 = jax.block_until_ready(_reference(x2, 3, 1))
    assert out2.shape == x2.shape, out2.shape
    assert jnp.allclose(out2, ref2, rtol=1e-5, atol=1e-5), \
        float(jnp.max(jnp.abs(out2 - ref2)))

    # Case 3: larger window (K=5, pad=2).
    x3 = jax.random.normal(k3, (2, 4, 16, 16), jnp.float32)
    out3 = jax.block_until_ready(ws_avg_pool2d(x3, kernel_size=5, padding=2))
    ref3 = jax.block_until_ready(_reference(x3, 5, 2))
    assert out3.shape == x3.shape, out3.shape
    assert jnp.allclose(out3, ref3, rtol=1e-5, atol=1e-5), \
        float(jnp.max(jnp.abs(out3 - ref3)))

    print("KERNEL_OK")
</pallas_src>

<mosaic_0001>
module attributes {stable_mosaic.version = 11 : i64} {
  func.func @_avg_pool_kernel(%arg0: i32, %arg1: memref<8x256xf32, #tpu.memory_space<vmem>>, %arg2: memref<7x256xf32, #tpu.memory_space<vmem>>, %arg3: memref<8x256xf32, #tpu.memory_space<vmem>>) attributes {dimension_semantics = [#tpu.dimension_semantics<parallel>], iteration_bounds = array<i64: 1>, scalar_prefetch = 0 : i64, scratch_operands = 0 : i64, tpu.core_type = #tpu.core_type<tc>, window_params = [{transform_indices = @transform_0, window_bounds = array<i64: 8, 256>}, {pipeline_mode = #tpu.pipeline_mode<synchronous>, transform_indices = @transform_1, window_bounds = array<i64: 7, 256>}, {transform_indices = @transform_2, window_bounds = array<i64: 8, 256>}]} {
    %c0 = arith.constant 0 : index
    %c0_0 = arith.constant 0 : index
    %0 = vector.load %arg1[%c0, %c0_0] : memref<8x256xf32, #tpu.memory_space<vmem>>, vector<8x256xf32>
    %c1_i32 = arith.constant 1 : i32
    %1 = tpu.dynamic_rotate %0 by %c1_i32 dim 1 : vector<8x256xf32>, i32 -> vector<8x256xf32>
    %c0_1 = arith.constant 0 : index
    %c0_2 = arith.constant 0 : index
    %2 = vector.load %arg2[%c0_1, %c0_2] : memref<7x256xf32, #tpu.memory_space<vmem>>, vector<1x256xf32>
    %3 = vector.broadcast %2 : vector<1x256xf32> to vector<8x256xf32>
    %4 = arith.mulf %1, %3 : vector<8x256xf32>
    %5 = arith.addf %0, %4 : vector<8x256xf32>
    %c255_i32 = arith.constant 255 : i32
    %6 = tpu.dynamic_rotate %0 by %c255_i32 dim 1 : vector<8x256xf32>, i32 -> vector<8x256xf32>
    %c2 = arith.constant 2 : index
    %c0_3 = arith.constant 0 : index
    %7 = vector.load %arg2[%c2, %c0_3] : memref<7x256xf32, #tpu.memory_space<vmem>>, vector<1x256xf32>
    %8 = vector.broadcast %7 : vector<1x256xf32> to vector<8x256xf32>
    %9 = arith.mulf %6, %8 : vector<8x256xf32>
    %10 = arith.addf %5, %9 : vector<8x256xf32>
    %c16_i32 = arith.constant 16 : i32
    %11 = tpu.dynamic_rotate %10 by %c16_i32 dim 1 : vector<8x256xf32>, i32 -> vector<8x256xf32>
    %c3 = arith.constant 3 : index
    %c0_4 = arith.constant 0 : index
    %12 = vector.load %arg2[%c3, %c0_4] : memref<7x256xf32, #tpu.memory_space<vmem>>, vector<1x256xf32>
    %13 = vector.broadcast %12 : vector<1x256xf32> to vector<8x256xf32>
    %14 = arith.mulf %11, %13 : vector<8x256xf32>
    %15 = arith.addf %10, %14 : vector<8x256xf32>
    %c240_i32 = arith.constant 240 : i32
    %16 = tpu.dynamic_rotate %10 by %c240_i32 dim 1 : vector<8x256xf32>, i32 -> vector<8x256xf32>
    %c5 = arith.constant 5 : index
    %c0_5 = arith.constant 0 : index
    %17 = vector.load %arg2[%c5, %c0_5] : memref<7x256xf32, #tpu.memory_space<vmem>>, vector<1x256xf32>
    %18 = vector.broadcast %17 : vector<1x256xf32> to vector<8x256xf32>
    %19 = arith.mulf %16, %18 : vector<8x256xf32>
    %20 = arith.addf %15, %19 : vector<8x256xf32>
    %c6 = arith.constant 6 : index
    %c0_6 = arith.constant 0 : index
    %21 = vector.load %arg2[%c6, %c0_6] : memref<7x256xf32, #tpu.memory_space<vmem>>, vector<1x256xf32>
    %22 = vector.broadcast %21 : vector<1x256xf32> to vector<8x256xf32>
    %23 = arith.mulf %20, %22 : vector<8x256xf32>
    %c0_7 = arith.constant 0 : index
    %c0_8 = arith.constant 0 : index
    %24 = vector.load %arg3[%c0_7, %c0_8] : memref<8x256xf32, #tpu.memory_space<vmem>>, vector<8x256xf32>
    tpu.vector_store %arg3[%c0_7, %c0_8], %23 {strides = array<i32>} : memref<8x256xf32, #tpu.memory_space<vmem>>, vector<8x256xf32>,
    return
  }
  func.func @transform_0(%arg0: i32) -> (i32, i32) {
    %c0_i32 = arith.constant 0 : i32
    %c0_i32_0 = arith.constant 0 : i32
    return %arg0, %c0_i32 : i32, i32
  }
  func.func @transform_1(%arg0: i32) -> (i32, i32) {
    %c0_i32 = arith.constant 0 : i32
    %c0_i32_0 = arith.constant 0 : i32
    %c0_i32_1 = arith.constant 0 : i32
    return %c0_i32, %c0_i32_0 : i32, i32
  }
  func.func @transform_2(%arg0: i32) -> (i32, i32) {
    %c0_i32 = arith.constant 0 : i32
    %c0_i32_0 = arith.constant 0 : i32
    return %arg0, %c0_i32 : i32, i32
  }
}

</mosaic_0001>

<bundles_post_ra>
// kernel: ws_avg_pool2d.1
= control target key start
LH: loop header
LB: loop body
LE: loop exit
PB: predicated region body
PF: predicated region fallthrough
CT: control target
= control target key end

     0   :  { %s139_s11 = smov 127   ;;  %s140_s12 = smov 1   ;;  %v17_v2 = vlaneseq  ;;  %s185_s0 = inlined_call_operand.vmem [shape: f32[8,256], index: 0, kind: input, shape index: {}]   ;;  %s186_s1 = inlined_call_operand.vmem [shape: f32[7,256], index: 1, kind: input, shape index: {}]   ;;  %s187_s2 = inlined_call_operand.vmem [shape: f32[8,256], index: 2, kind: output, shape index: {}]  }
   0x1   :  { %v11_v0 = vld [vmem:[%s185_s0] sm:$0xff]  ;;  %v12_v1 = vld [vmem:[%s185_s0 + $0x8] sm:$0xff]  ;;  %s141_s0 = smov 16   ;;  %s142_s19 = smov 112  }
   0x2   :  { %38 = vrot.lane.b32.xlu1 %v11_v0, %s139_s11  ;;  %13 = vrot.lane.b32.xlu0 %v11_v0, %s140_s12  ;;  %v25_v3 = vshrl.u32 %v17_v2, 7  ;;  %v18_v4 = vand.u32 127, %v17_v2  ;;  %v22_v7 = vld [vmem:[%s186_s1] ss:$8 sm:$0x3] }
   0x3   :  { %v131_v10 = vld [vmem:[%s186_s1 + $0x2] ss:$8 sm:$0x3]  ;;  %v132_v29 = vld [vmem:[%s186_s1 + $0x3] ss:$8 sm:$0x3] }
   0x4   :  { %v26_v5 = vsub.s32 0, %v25_v3  ;;  %v30_v6 = vsub.s32 1, %v25_v3  ;;  %vm42_vm0 = vcmp.lt.s32.totalorder %v18_v4, 127  ;;  %vm19_vm1 = vcmp.lt.s32.totalorder %v18_v4, 1 }
   0x5   :  { %vm66_vm2 = vcmp.lt.s32.totalorder %v18_v4, 16  ;;  %v133_v32 = vld [vmem:[%s186_s1 + $0x5] ss:$8 sm:$0x3]  ;;  %vm90_vm3 = vcmp.lt.s32.totalorder %v18_v4, 112 }
   0x6   :  { %40 = vrot.lane.b32.xlu1 %v12_v1, %s139_s11  ;;  %15 = vrot.lane.b32.xlu0 %v12_v1, %s140_s12  ;;  %v27_v11 = vrot.slane %v22_v7, %v26_v5  ;;  %v31_v12 = vrot.slane %v22_v7, %v30_v6  ;;  %v51_v13 = vrot.slane %v131_v10, %v26_v5  ;;  %v134_v41 = vld [vmem:[%s186_s1 + $0x6] ss:$8 sm:$0x3] }
   0x7   :  { %v55_v14 = vrot.slane %v131_v10, %v30_v6  ;;  %v75_v30 = vrot.slane %v132_v29, %v26_v5  ;;  %v79_v31 = vrot.slane %v132_v29, %v30_v6  ;;  %v99_v39 = vrot.slane %v133_v32, %v26_v5 }
   0x8   :  { %v103_v40 = vrot.slane %v133_v32, %v30_v6  ;;  %v116_v44 = vrot.slane %v134_v41, %v26_v5  ;;  %v120_v45 = vrot.slane %v134_v41, %v30_v6 }
  0x74   :  { %v39_v8 = vpop.permute.xlu1 %38  ;;  %v14_v9 = vpop.permute.xlu0 %13 }
  0x78   :  { %v41_v15 = vpop.permute.xlu1 %40  ;;  %v16_v16 = vpop.permute.xlu0 %15 }
  0x79   :  { %v43_v17 = vsel %vm42_vm0, %v39_v8, %v41_v15  ;;  %v44_v18 = vsel %vm42_vm0, %v41_v15, %v39_v8  ;;  %v20_v19 = vsel %vm19_vm1, %v14_v9, %v16_v16  ;;  %v21_v20 = vsel %vm19_vm1, %v16_v16, %v14_v9 }
  0x7a   :  { %v34_v21 = vmul.f32 %v27_v11, %v21_v20  ;;  %v35_v22 = vmul.f32 %v31_v12, %v20_v19  ;;  %v58_v23 = vmul.f32 %v51_v13, %v43_v17  ;;  %v59_v24 = vmul.f32 %v55_v14, %v44_v18 }
  0x7c   :  { %v36_v25 = vadd.f32 %v34_v21, %v11_v0  ;;  %v37_v26 = vadd.f32 %v35_v22, %v12_v1 }
  0x7e   :  { %v60_v27 = vadd.f32 %v58_v23, %v36_v25  ;;  %v61_v28 = vadd.f32 %v59_v24, %v37_v26 }
  0x80   :  { %62 = vrot.lane.b32.xlu0 %v60_v27, %s141_s0  ;;  %64 = vrot.lane.b32.xlu1 %v61_v28, %s141_s0 }
  0x84   :  { %86 = vrot.lane.b32.xlu0 %v60_v27, %s142_s19  ;;  %88 = vrot.lane.b32.xlu1 %v61_v28, %s142_s19 }
  0xf2   :  { %v63_v33 = vpop.permute.xlu0 %62  ;;  %v65_v34 = vpop.permute.xlu1 %64 }
  0xf3   :  { %v67_v35 = vsel %vm66_vm2, %v63_v33, %v65_v34  ;;  %v68_v36 = vsel %vm66_vm2, %v65_v34, %v63_v33 }
  0xf4   :  { %v82_v37 = vmul.f32 %v75_v30, %v68_v36  ;;  %v83_v38 = vmul.f32 %v79_v31, %v67_v35 }
  0xf6   :  { %v87_v42 = vpop.permute.xlu0 %86  ;;  %v89_v43 = vpop.permute.xlu1 %88  ;;  %v84_v48 = vadd.f32 %v82_v37, %v60_v27  ;;  %v85_v49 = vadd.f32 %v83_v38, %v61_v28 }
  0xf7   :  { %v91_v46 = vsel %vm90_vm3, %v87_v42, %v89_v43  ;;  %v92_v47 = vsel %vm90_vm3, %v89_v43, %v87_v42 }
  0xf8   :  { %v106_v50 = vmul.f32 %v99_v39, %v91_v46  ;;  %v107_v51 = vmul.f32 %v103_v40, %v92_v47 }
  0xfa   :  { %v108_v52 = vadd.f32 %v106_v50, %v84_v48  ;;  %v109_v53 = vadd.f32 %v107_v51, %v85_v49 }
  0xfc   :  { %v123_v54 = vmul.f32 %v116_v44, %v108_v52  ;;  %v124_v55 = vmul.f32 %v120_v45, %v109_v53 }
  0xfe   :  { %125 = vst [vmem:[%s187_s2] sm:$0xff] %v123_v54  ;;  %126 = vst [vmem:[%s187_s2 + $0x8] sm:$0xff] %v124_v55 }

</bundles_post_ra>
